<compile_context>
chip_gen: v5e
topology: v5e:2x2
jax: 0.10.0
libtpu: 0.0.40
codegen_flags: <defaults>
</compile_context>

<pallas_src>
import math

import numpy as np
import jax
import jax.numpy as jnp
from jax import lax
from jax.experimental import pallas as pl
from jax.experimental.pallas import tpu as pltpu

CLASSES = 6
BN_EPS = 1e-5

# (kh, kw, stride, pad, cin, cout) for the four conv blocks of Homebrew.
CONV_DEFS = (
    (5, 5, 2, 2, 1, 8),
    (3, 3, 2, 1, 8, 16),
    (3, 3, 2, 1, 16, 32),
    (3, 3, 2, 1, 32, 64),
)

_VMEM = pl.BlockSpec(memory_space=pltpu.MemorySpace.VMEM)


# -----------------------------------------------------------------------------
# Fused Pallas kernel: the whole forward pass is 5 VMEM-resident matmuls
# -----------------------------------------------------------------------------
def homebrew_kernel(x_ref,
                    k1, b1, f1,
                    k2, b2, f2,
                    k3, b3, f3,
                    k4, b4, f4,
                    wh_ref, bh_ref,
                    o_ref):
    """Whole Homebrew forward for the batch.

    x_ref : (N, H*W*Cin0)          flattened NHWC input, index = (iy*W+ix)*Cin + c.
    k{l}  : (HW*Cin, OHW*Cout)     dense conv operator, BN scale pre-folded.
    b{l}  : (1, OHW*Cout)          conv bias (BN scale folded), channel-fastest.
    f{l}  : (1, OHW*Cout)          BN shift (beta - mean*scale), added after ReLU.
    wh    : (P4*C4, CLASSES)       head weight with AdaptiveAvgPool folded in.
    bh    : (1, CLASSES)           head bias.
    """
    act = x_ref[...]
    for k_ref, b_ref, f_ref in ((k1, b1, f1), (k2, b2, f2),
                                (k3, b3, f3), (k4, b4, f4)):
        z = jnp.dot(act, k_ref[...], preferred_element_type=jnp.float32)
        act = jnp.maximum(z + b_ref[...], 0.0) + f_ref[...]
    o_ref[...] = (jnp.dot(act, wh_ref[...], preferred_element_type=jnp.float32)
                  + bh_ref[...])


# -----------------------------------------------------------------------------
# Host-side precomputation: conv -> exact dense operator (structure + weights)
# -----------------------------------------------------------------------------
def build_selection(h, w, kh, kw, stride, pad):
    """S[t, p, q] = 1 iff output pixel p reads input pixel q under kernel tap t.

    Out-of-bounds taps (zero padding) select nothing (all-zero row), so padding
    never needs to be materialized.
    """
    oh = (h + 2 * pad - kh) // stride + 1
    ow = (w + 2 * pad - kw) // stride + 1
    sel = np.zeros((kh * kw, oh * ow, h * w), np.float32)
    for ki in range(kh):
        for kj in range(kw):
            t = ki * kw + kj
            for oy in range(oh):
                iy = oy * stride + ki - pad
                if iy < 0 or iy >= h:
                    continue
                for ox in range(ow):
                    ix = ox * stride + kj - pad
                    if ix < 0 or ix >= w:
                        continue
                    sel[t, oy * ow + ox, iy * w + ix] = 1.0
    return sel, oh, ow


def kaiming_normal(key, kh, kw, cin, cout, a=0.1):
    # fan_in mode, leaky_relu gain (PyTorch init.kaiming_normal_ with a=0.1)
    fan_in = kh * kw * cin
    gain = math.sqrt(2.0 / (1.0 + a * a))
    std = gain / math.sqrt(fan_in)
    return jax.random.normal(key, (kh, kw, cin, cout), dtype=jnp.float32) * std


def make_params(h, w, seed=0):
    key = jax.random.PRNGKey(seed)
    keys = jax.random.split(key, len(CONV_DEFS) + 2)
    convs = []
    cur_h, cur_w = h, w
    for i, (kh, kw, stride, pad, cin, cout) in enumerate(CONV_DEFS):
        w4 = np.asarray(kaiming_normal(keys[i], kh, kw, cin, cout))
        w_taps = w4.reshape(kh * kw, cin, cout)               # t = ki*kw + kj
        bias = np.zeros((cout,), np.float32)                  # conv bias zeroed
        # BatchNorm2d defaults: gamma=1, beta=0, running_mean=0, running_var=1
        gamma = np.ones((cout,), np.float32)
        beta = np.zeros((cout,), np.float32)
        r_mean = np.zeros((cout,), np.float32)
        r_var = np.ones((cout,), np.float32)
        scale = gamma / np.sqrt(r_var + BN_EPS)               # > 0 here
        shift = beta - r_mean * scale
        # Fold BN scale through the ReLU into the conv (valid since scale > 0):
        #   relu(conv + b) * scale + shift == relu(x @ (W*scale) + b*scale) + shift
        w_fold = w_taps * scale[None, None, :]
        b_fold = bias * scale
        # Dense operator: K[q*Cin + c, p*Cout + co] = sum_t sel[t,p,q] * w_fold[t,c,co]
        sel, oh, ow = build_selection(cur_h, cur_w, kh, kw, stride, pad)
        k_dense = np.einsum('tpq,tcd->qcpd', sel, w_fold).reshape(
            cur_h * cur_w * cin, oh * ow * cout)
        b_row = np.tile(b_fold, oh * ow)[None, :]             # channel-fastest
        f_row = np.tile(shift, oh * ow)[None, :]
        convs.append(dict(kh=kh, kw=kw, stride=stride, pad=pad, cin=cin, cout=cout,
                          w_taps=jnp.asarray(w_taps), bias=jnp.asarray(bias),
                          scale=jnp.asarray(scale), shift=jnp.asarray(shift),
                          k_dense=jnp.asarray(k_dense),
                          b_row=jnp.asarray(b_row), f_row=jnp.asarray(f_row)))
        cur_h, cur_w = oh, ow
    # Linear(64 -> 6): PyTorch default init U(-1/sqrt(fan_in), 1/sqrt(fan_in))
    bound = 1.0 / math.sqrt(64)
    w_lin = jax.random.uniform(keys[-2], (64, CLASSES), jnp.float32,
                               minval=-bound, maxval=bound)
    b_lin = jax.random.uniform(keys[-1], (1, CLASSES), jnp.float32,
                               minval=-bound, maxval=bound)
    # Fold AdaptiveAvgPool2d(1) into the head: mean over P4 positions.
    p4 = cur_h * cur_w
    w_head = jnp.asarray(np.tile(np.asarray(w_lin), (p4, 1)) / float(p4))
    return dict(convs=convs, w_lin=w_lin, b_lin=b_lin, w_head=w_head)


# -----------------------------------------------------------------------------
# Forward pass (single gridless pallas_call; everything VMEM resident)
# -----------------------------------------------------------------------------
def homebrew_forward(x_nchw, params):
    n, c, h, w = x_nchw.shape
    # NCHW -> NHWC -> (N, H*W*C); pure layout glue at the kernel boundary.
    x = jnp.transpose(x_nchw, (0, 2, 3, 1)).astype(jnp.float32).reshape(n, h * w * c)
    args = [x]
    for layer in params["convs"]:
        args += [layer["k_dense"], layer["b_row"], layer["f_row"]]
    args += [params["w_head"], params["b_lin"]]
    return pl.pallas_call(
        homebrew_kernel,
        out_shape=jax.ShapeDtypeStruct((n, CLASSES), jnp.float32),
        in_specs=[_VMEM] * len(args),
        out_specs=_VMEM,
    )(*args)


# -----------------------------------------------------------------------------
# Pure-JAX reference (for self-check): explicit convs, un-folded BN
# -----------------------------------------------------------------------------
def reference_forward(x_nchw, params):
    x = jnp.transpose(x_nchw, (0, 2, 3, 1)).astype(jnp.float32)   # NHWC
    for layer in params["convs"]:
        w_hwio = layer["w_taps"].reshape(layer["kh"], layer["kw"],
                                         layer["cin"], layer["cout"])
        y = lax.conv_general_dilated(
            x, w_hwio,
            window_strides=(layer["stride"], layer["stride"]),
            padding=[(layer["pad"], layer["pad"]), (layer["pad"], layer["pad"])],
            dimension_numbers=("NHWC", "HWIO", "NHWC"),
            precision=lax.Precision.HIGHEST)
        y = y + layer["bias"].reshape(1, 1, 1, -1)
        y = jnp.maximum(y, 0.0)
        x = (y * layer["scale"].reshape(1, 1, 1, -1)
             + layer["shift"].reshape(1, 1, 1, -1))
    pooled = jnp.mean(x, axis=(1, 2))                              # (N, C)
    return (jnp.dot(pooled, params["w_lin"], precision=lax.Precision.HIGHEST)
            + params["b_lin"])


if __name__ == "__main__":
    key = jax.random.PRNGKey(0)
    # NCHW input, 1 channel, 16x16 spatial (16 -> 8 -> 4 -> 2 -> 1 after 4 stride-2 convs)
    x = jax.random.normal(key, (2, 1, 16, 16), dtype=jnp.float32)
    params = make_params(h=16, w=16, seed=0)

    out = homebrew_forward(x, params)
    out = jax.block_until_ready(out)
    assert out.shape == (2, CLASSES)

    ref = jax.block_until_ready(reference_forward(x, params))
    # Loose tolerance only to stay robust to MXU precision modes; real indexing
    # bugs would produce O(1) errors.
    assert bool(jnp.allclose(out, ref, rtol=0.0, atol=5e-2)), "mismatch vs reference"

    print("KERNEL_OK")
</pallas_src>

<mosaic_0001>
module attributes {stable_mosaic.version = 11 : i64} {
  func.func @homebrew_kernel(%arg0: memref<2x256xf32, #tpu.memory_space<vmem>>, %arg1: memref<256x512xf32, #tpu.memory_space<vmem>>, %arg2: memref<1x512xf32, #tpu.memory_space<vmem>>, %arg3: memref<1x512xf32, #tpu.memory_space<vmem>>, %arg4: memref<512x256xf32, #tpu.memory_space<vmem>>, %arg5: memref<1x256xf32, #tpu.memory_space<vmem>>, %arg6: memref<1x256xf32, #tpu.memory_space<vmem>>, %arg7: memref<256x128xf32, #tpu.memory_space<vmem>>, %arg8: memref<1x128xf32, #tpu.memory_space<vmem>>, %arg9: memref<1x128xf32, #tpu.memory_space<vmem>>, %arg10: memref<128x64xf32, #tpu.memory_space<vmem>>, %arg11: memref<1x64xf32, #tpu.memory_space<vmem>>, %arg12: memref<1x64xf32, #tpu.memory_space<vmem>>, %arg13: memref<64x6xf32, #tpu.memory_space<vmem>>, %arg14: memref<1x6xf32, #tpu.memory_space<vmem>>, %arg15: memref<2x6xf32, #tpu.memory_space<vmem>>) attributes {dimension_semantics = [], scalar_prefetch = 0 : i64, scratch_operands = 0 : i64, tpu.core_type = #tpu.core_type<tc>} {
    %c0 = arith.constant 0 : index
    %c0_0 = arith.constant 0 : index
    %0 = vector.load %arg0[%c0, %c0_0] : memref<2x256xf32, #tpu.memory_space<vmem>>, vector<2x256xf32>
    %c0_1 = arith.constant 0 : index
    %c0_2 = arith.constant 0 : index
    %1 = vector.load %arg1[%c0_1, %c0_2] : memref<256x512xf32, #tpu.memory_space<vmem>>, vector<256x512xf32>
    %cst = arith.constant dense<0.000000e+00> : vector<2x512xf32>
    %2 = tpu.matmul %0, %1, %cst {dimension_numbers = #tpu.dot_dimension_numbers<[1], [0], [0], [1], [0, 0, 1, 1], [], []>} : vector<2x256xf32>, vector<256x512xf32>, vector<2x512xf32> -> vector<2x512xf32>
    %c0_3 = arith.constant 0 : index
    %c0_4 = arith.constant 0 : index
    %3 = vector.load %arg2[%c0_3, %c0_4] : memref<1x512xf32, #tpu.memory_space<vmem>>, vector<1x512xf32>
    %4 = vector.broadcast %3 : vector<1x512xf32> to vector<2x512xf32>
    %5 = arith.addf %2, %4 : vector<2x512xf32>
    %cst_5 = arith.constant 0.000000e+00 : f32
    %6 = vector.broadcast %cst_5 : f32 to vector<2x512xf32>
    %7 = arith.maximumf %5, %6 : vector<2x512xf32>
    %c0_6 = arith.constant 0 : index
    %c0_7 = arith.constant 0 : index
    %8 = vector.load %arg3[%c0_6, %c0_7] : memref<1x512xf32, #tpu.memory_space<vmem>>, vector<1x512xf32>
    %9 = vector.broadcast %8 : vector<1x512xf32> to vector<2x512xf32>
    %10 = arith.addf %7, %9 : vector<2x512xf32>
    %c0_8 = arith.constant 0 : index
    %c0_9 = arith.constant 0 : index
    %11 = vector.load %arg4[%c0_8, %c0_9] : memref<512x256xf32, #tpu.memory_space<vmem>>, vector<512x256xf32>
    %cst_10 = arith.constant dense<0.000000e+00> : vector<2x256xf32>
    %12 = tpu.matmul %10, %11, %cst_10 {dimension_numbers = #tpu.dot_dimension_numbers<[1], [0], [0], [1], [0, 0, 1, 1], [], []>} : vector<2x512xf32>, vector<512x256xf32>, vector<2x256xf32> -> vector<2x256xf32>
    %c0_11 = arith.constant 0 : index
    %c0_12 = arith.constant 0 : index
    %13 = vector.load %arg5[%c0_11, %c0_12] : memref<1x256xf32, #tpu.memory_space<vmem>>, vector<1x256xf32>
    %14 = vector.broadcast %13 : vector<1x256xf32> to vector<2x256xf32>
    %15 = arith.addf %12, %14 : vector<2x256xf32>
    %cst_13 = arith.constant 0.000000e+00 : f32
    %16 = vector.broadcast %cst_13 : f32 to vector<2x256xf32>
    %17 = arith.maximumf %15, %16 : vector<2x256xf32>
    %c0_14 = arith.constant 0 : index
    %c0_15 = arith.constant 0 : index
    %18 = vector.load %arg6[%c0_14, %c0_15] : memref<1x256xf32, #tpu.memory_space<vmem>>, vector<1x256xf32>
    %19 = vector.broadcast %18 : vector<1x256xf32> to vector<2x256xf32>
    %20 = arith.addf %17, %19 : vector<2x256xf32>
    %c0_16 = arith.constant 0 : index
    %c0_17 = arith.constant 0 : index
    %21 = vector.load %arg7[%c0_16, %c0_17] : memref<256x128xf32, #tpu.memory_space<vmem>>, vector<256x128xf32>
    %cst_18 = arith.constant dense<0.000000e+00> : vector<2x128xf32>
    %22 = tpu.matmul %20, %21, %cst_18 {dimension_numbers = #tpu.dot_dimension_numbers<[1], [0], [0], [1], [0, 0, 1, 1], [], []>} : vector<2x256xf32>, vector<256x128xf32>, vector<2x128xf32> -> vector<2x128xf32>
    %c0_19 = arith.constant 0 : index
    %c0_20 = arith.constant 0 : index
    %23 = vector.load %arg8[%c0_19, %c0_20] : memref<1x128xf32, #tpu.memory_space<vmem>>, vector<1x128xf32>
    %24 = vector.broadcast %23 : vector<1x128xf32> to vector<2x128xf32>
    %25 = arith.addf %22, %24 : vector<2x128xf32>
    %cst_21 = arith.constant 0.000000e+00 : f32
    %26 = vector.broadcast %cst_21 : f32 to vector<2x128xf32>
    %27 = arith.maximumf %25, %26 : vector<2x128xf32>
    %c0_22 = arith.constant 0 : index
    %c0_23 = arith.constant 0 : index
    %28 = vector.load %arg9[%c0_22, %c0_23] : memref<1x128xf32, #tpu.memory_space<vmem>>, vector<1x128xf32>
    %29 = vector.broadcast %28 : vector<1x128xf32> to vector<2x128xf32>
    %30 = arith.addf %27, %29 : vector<2x128xf32>
    %c0_24 = arith.constant 0 : index
    %c0_25 = arith.constant 0 : index
    %31 = vector.load %arg10[%c0_24, %c0_25] : memref<128x64xf32, #tpu.memory_space<vmem>>, vector<128x64xf32>
    %cst_26 = arith.constant dense<0.000000e+00> : vector<2x64xf32>
    %32 = tpu.matmul %30, %31, %cst_26 {dimension_numbers = #tpu.dot_dimension_numbers<[1], [0], [0], [1], [0, 0, 1, 1], [], []>} : vector<2x128xf32>, vector<128x64xf32>, vector<2x64xf32> -> vector<2x64xf32>
    %c0_27 = arith.constant 0 : index
    %c0_28 = arith.constant 0 : index
    %33 = vector.load %arg11[%c0_27, %c0_28] : memref<1x64xf32, #tpu.memory_space<vmem>>, vector<1x64xf32>
    %34 = vector.broadcast %33 : vector<1x64xf32> to vector<2x64xf32>
    %35 = arith.addf %32, %34 : vector<2x64xf32>
    %cst_29 = arith.constant 0.000000e+00 : f32
    %36 = vector.broadcast %cst_29 : f32 to vector<2x64xf32>
    %37 = arith.maximumf %35, %36 : vector<2x64xf32>
    %c0_30 = arith.constant 0 : index
    %c0_31 = arith.constant 0 : index
    %38 = vector.load %arg12[%c0_30, %c0_31] : memref<1x64xf32, #tpu.memory_space<vmem>>, vector<1x64xf32>
    %39 = vector.broadcast %38 : vector<1x64xf32> to vector<2x64xf32>
    %40 = arith.addf %37, %39 : vector<2x64xf32>
    %c0_32 = arith.constant 0 : index
    %c0_33 = arith.constant 0 : index
    %41 = vector.load %arg13[%c0_32, %c0_33] : memref<64x6xf32, #tpu.memory_space<vmem>>, vector<64x6xf32>
    %cst_34 = arith.constant dense<0.000000e+00> : vector<2x6xf32>
    %42 = tpu.matmul %40, %41, %cst_34 {dimension_numbers = #tpu.dot_dimension_numbers<[1], [0], [0], [1], [0, 0, 1, 1], [], []>} : vector<2x64xf32>, vector<64x6xf32>, vector<2x6xf32> -> vector<2x6xf32>
    %c0_35 = arith.constant 0 : index
    %c0_36 = arith.constant 0 : index
    %43 = vector.load %arg14[%c0_35, %c0_36] : memref<1x6xf32, #tpu.memory_space<vmem>>, vector<1x6xf32>
    %44 = vector.broadcast %43 : vector<1x6xf32> to vector<2x6xf32>
    %45 = arith.addf %42, %44 : vector<2x6xf32>
    %c0_37 = arith.constant 0 : index
    %c0_38 = arith.constant 0 : index
    %46 = vector.load %arg15[%c0_37, %c0_38] : memref<2x6xf32, #tpu.memory_space<vmem>>, vector<2x6xf32>
    tpu.vector_store %arg15[%c0_37, %c0_38], %45 {strides = array<i32>} : memref<2x6xf32, #tpu.memory_space<vmem>>, vector<2x6xf32>,
    return
  }
}

</mosaic_0001>

<bundles_post_ra>
// kernel: tpu_custom_call.1
= control target key start
LH: loop header
LB: loop body
LE: loop exit
PB: predicated region body
PF: predicated region fallthrough
CT: control target
= control target key end

     0   :  { %20 = vsyncpa [#allocation3], 0  ;;  %s1243_s0 = inlined_call_operand.vmem [shape: f32[2,256], index: 0, kind: input, shape index: {}]   ;;  %s1244_s1 = inlined_call_operand.hbm [shape: f32[256,512], index: 1, kind: input, shape index: {}]   ;;  %s1245_s2 = inlined_call_operand.vmem [shape: f32[1,512], index: 2, kind: input, shape index: {}]   ;;  %s1246_s3 = inlined_call_operand.vmem [shape: f32[1,512], index: 3, kind: input, shape index: {}]   ;;  %s1247_s4 = inlined_call_operand.hbm [shape: f32[512,256], index: 4, kind: input, shape index: {}]   ;;  %s1248_s5 = inlined_call_operand.vmem [shape: f32[1,256], index: 5, kind: input, shape index: {}]   ;;  %s1249_s6 = inlined_call_operand.vmem [shape: f32[1,256], index: 6, kind: input, shape index: {}]   ;;  %s1250_s7 = inlined_call_operand.hbm [shape: f32[256,128], index: 7, kind: input, shape index: {}]   ;;  %s1251_s8 = inlined_call_operand.vmem [shape: f32[1,128], index: 8, kind: input, shape index: {}]   ;;  %s1252_s9 = inlined_call_operand.vmem [shape: f32[1,128], index: 9, kind: input, shape index: {}]   ;;  %s1253_s10 = inlined_call_operand.vmem [shape: f32[128,64], index: 10, kind: input, shape index: {}]   ;;  %s1254_s11 = inlined_call_operand.vmem [shape: f32[1,64], index: 11, kind: input, shape index: {}]   ;;  %s1255_s12 = inlined_call_operand.vmem [shape: f32[1,64], index: 12, kind: input, shape index: {}]   ;;  %s1256_s13 = inlined_call_operand.vmem [shape: f32[64,6], index: 13, kind: input, shape index: {}]   ;;  %s1257_s14 = inlined_call_operand.vmem [shape: f32[1,6], index: 14, kind: input, shape index: {}]   ;;  %s1258_s15 = inlined_call_operand.hbm [shape: f32[2,6], index: 15, kind: output, shape index: {}]  }
   0x1   :  { %21 = vsyncpa [#allocation6], 0  ;;  %s46_s20 = sshll.u32 %s1247_s4, 4  ;;  %s47_s20 = int_to_ptr.hbm [resolvable:$true] %s46_s20 }
   0x2   :  { %22 = vsyncpa [#allocation4], 0  ;;  %s1027_s21 = smov [#allocation5]   ;;  %s29_s25 = sshll.u32 %s1244_s1, 4  ;;  %s30_s25 = int_to_ptr.hbm [resolvable:$true] %s29_s25 }
   0x3   :  { %s48_s22 = sshll.u32 %s1027_s21, 4  ;;  %s1028_s26 = smov 256   ;;  %s49_s22 = int_to_ptr.vmem [resolvable:$true] %s48_s22 }
   0x4   :  { %s1029_s27 = smov 16   ;;  %s1030_s28 = smov [#allocation2]  }
   0x5   :  { %54 = dma.hbm_to_vmem [thread:$0]  %s47_s20, 16384, %s49_s22, [#allocation6], %s1028_s26, %s1028_s26, %s1029_s27  }
   0x6   :  { %s31_s29 = sshll.u32 %s1030_s28, 4  ;;  %s1031_s30 = smov 512   ;;  %s32_s29 = int_to_ptr.vmem [resolvable:$true] %s31_s29 }
   0x7   :  { %s1032_s16 = smov 32   ;;  %s63_s18 = sshll.u32 %s1250_s7, 4  ;;  %s64_s18 = int_to_ptr.hbm [resolvable:$true] %s63_s18 }
   0x8   :  { %37 = dma.hbm_to_vmem [thread:$0]  %s30_s25, 16384, %s32_s29, [#allocation3], %s1031_s30, %s1031_s30, %s1032_s16  }
   0x9   :  { %s1033_s19 = smov [#allocation7]   ;;  %s1034_s23 = smov 128  }
   0xa   :  { %s65_s21 = sshll.u32 %s1033_s19, 4  ;;  %s1035_s1 = smov 8   ;;  %s66_s21 = int_to_ptr.vmem [resolvable:$true] %s65_s21 }
   0xb   :  { %71 = dma.hbm_to_vmem [thread:$0]  %s64_s18, 4096, %s66_s21, [#allocation6], %s1034_s23, %s1034_s23, %s1035_s1  }
   0xc   :  { %1021 = dma.done.wait [#allocation3], 16384  }
   0xd   :  { %1022 = vsyncadd [#allocation3], 4294950912 }
   0xe   :  { %1023 = dma.done.wait [#allocation6], 20480  }
   0xf   :  { %1024 = vsyncadd [#allocation6], 4294946816  ;;  %v159_v0 = vld [vmem:[#allocation2 + $0x1e0] sm:$0xff]  ;;  %v160_v1 = vld [vmem:[#allocation2 + $0x1e8] sm:$0xff]  ;;  %vm865_vm0 = vcmask 523264   ;;  %vm889_vm1 = vcmask 41984  }
  0x10   :  { %v155_v2 = vld [vmem:[#allocation2 + $0x1c0] sm:$0xff]  ;;  %243 = vmatpush.msra.mxu0 %v159_v0  ;;  %283 = vmatpush.msra.mxu2 %v160_v1  ;;  %v156_v4 = vld [vmem:[#allocation2 + $0x1c8] sm:$0xff]  ;;  %v161_v62 = vld [vmem:[#allocation2 + $0x1f0] sm:$0xff] }
  0x11   :  { %v223_v3 = vld [vmem:[#allocation2 + $0x3e0] sm:$0xff]  ;;  %v224_v5 = vld [vmem:[#allocation2 + $0x3e8] sm:$0xff]  ;;  %v162_v63 = vld [vmem:[#allocation2 + $0x1f8] sm:$0xff] }
  0x12   :  { %263 = vmatpush.msra.mxu1 %v223_v3  ;;  %303 = vmatpush.msra.mxu3 %v224_v5  ;;  %v151_v6 = vld [vmem:[#allocation2 + $0x1a0] sm:$0xff]  ;;  %v152_v8 = vld [vmem:[#allocation2 + $0x1a8] sm:$0xff]  ;;  %v225_v3 = vld [vmem:[#allocation2 + $0x3f0] sm:$0xff] }
  0x13   :  { %v219_v7 = vld [vmem:[#allocation2 + $0x3c0] sm:$0xff]  ;;  %244 = vmatpush.msra.mxu0 %v155_v2  ;;  %284 = vmatpush.msra.mxu2 %v156_v4  ;;  %v220_v9 = vld [vmem:[#allocation2 + $0x3c8] sm:$0xff]  ;;  %v157_v2 = vld [vmem:[#allocation2 + $0x1d0] sm:$0xff] }
  0x14   :  { %v215_v10 = vld [vmem:[#allocation2 + $0x3a0] sm:$0xff]  ;;  %264 = vmatpush.msra.mxu1 %v219_v7  ;;  %304 = vmatpush.msra.mxu3 %v220_v9  ;;  %v148_v12 = vld [vmem:[#allocation2 + $0x188] sm:$0xff]  ;;  %v98_v4 = vld [vmem:[%s1243_s0] sm:$0xf] }
  0x15   :  { %v147_v11 = vld [vmem:[#allocation2 + $0x180] sm:$0xff]  ;;  %v216_v13 = vld [vmem:[#allocation2 + $0x3a8] sm:$0xff]  ;;  %245 = vmatpush.msra.mxu0 %v151_v6  ;;  %285 = vmatpush.msra.mxu2 %v152_v8  ;;  %v158_v5 = vld [vmem:[#allocation2 + $0x1d8] sm:$0xff]  ;;  %238 = vst [vmem:[#allocation1] ss:$4 sm:$0xff] %v98_v4 }
  0x16   :  { %v211_v14 = vld [vmem:[#allocation2 + $0x380] sm:$0xff]  ;;  %v212_v15 = vld [vmem:[#allocation2 + $0x388] sm:$0xff]  ;;  %265 = vmatpush.msra.mxu1 %v215_v10  ;;  %305 = vmatpush.msra.mxu3 %v216_v13  ;;  %v226_v6 = vld [vmem:[#allocation2 + $0x3f8] sm:$0xff] }
  0x17   :  { %v143_v16 = vld [vmem:[#allocation2 + $0x160] sm:$0xff]  ;;  %v144_v17 = vld [vmem:[#allocation2 + $0x168] sm:$0xff]  ;;  %246 = vmatpush.msra.mxu0 %v147_v11  ;;  %286 = vmatpush.msra.mxu2 %v148_v12  ;;  %v153_v7 = vld [vmem:[#allocation2 + $0x1b0] sm:$0xff] }
  0x18   :  { %v207_v18 = vld [vmem:[#allocation2 + $0x360] sm:$0xff]  ;;  %v208_v19 = vld [vmem:[#allocation2 + $0x368] sm:$0xff]  ;;  %266 = vmatpush.msra.mxu1 %v211_v14  ;;  %306 = vmatpush.msra.mxu3 %v212_v15  ;;  %v221_v8 = vld [vmem:[#allocation2 + $0x3d0] sm:$0xff] }
  0x19   :  { %v139_v20 = vld [vmem:[#allocation2 + $0x140] sm:$0xff]  ;;  %v140_v21 = vld [vmem:[#allocation2 + $0x148] sm:$0xff]  ;;  %247 = vmatpush.msra.mxu0 %v143_v16  ;;  %287 = vmatpush.msra.mxu2 %v144_v17  ;;  %v154_v9 = vld [vmem:[#allocation2 + $0x1b8] sm:$0xff] }
  0x1a   :  { %v203_v22 = vld [vmem:[#allocation2 + $0x340] sm:$0xff]  ;;  %v204_v23 = vld [vmem:[#allocation2 + $0x348] sm:$0xff]  ;;  %267 = vmatpush.msra.mxu1 %v207_v18  ;;  %307 = vmatpush.msra.mxu3 %v208_v19  ;;  %v222_v10 = vld [vmem:[#allocation2 + $0x3d8] sm:$0xff] }
  0x1b   :  { %v135_v24 = vld [vmem:[#allocation2 + $0x120] sm:$0xff]  ;;  %v136_v25 = vld [vmem:[#allocation2 + $0x128] sm:$0xff]  ;;  %248 = vmatpush.msra.mxu0 %v139_v20  ;;  %288 = vmatpush.msra.mxu2 %v140_v21  ;;  %v149_v11 = vld [vmem:[#allocation2 + $0x190] sm:$0xff] }
  0x1c   :  { %v199_v26 = vld [vmem:[#allocation2 + $0x320] sm:$0xff]  ;;  %v200_v27 = vld [vmem:[#allocation2 + $0x328] sm:$0xff]  ;;  %268 = vmatpush.msra.mxu1 %v203_v22  ;;  %308 = vmatpush.msra.mxu3 %v204_v23  ;;  %v217_v12 = vld [vmem:[#allocation2 + $0x3b0] sm:$0xff] }
  0x1d   :  { %v131_v28 = vld [vmem:[#allocation2 + $0x100] sm:$0xff]  ;;  %v132_v29 = vld [vmem:[#allocation2 + $0x108] sm:$0xff]  ;;  %249 = vmatpush.msra.mxu0 %v135_v24  ;;  %289 = vmatpush.msra.mxu2 %v136_v25  ;;  %v150_v13 = vld [vmem:[#allocation2 + $0x198] sm:$0xff] }
  0x1e   :  { %v195_v30 = vld [vmem:[#allocation2 + $0x300] sm:$0xff]  ;;  %v196_v31 = vld [vmem:[#allocation2 + $0x308] sm:$0xff]  ;;  %269 = vmatpush.msra.mxu1 %v199_v26  ;;  %309 = vmatpush.msra.mxu3 %v200_v27  ;;  %v218_v14 = vld [vmem:[#allocation2 + $0x3b8] sm:$0xff] }
  0x1f   :  { %v127_v32 = vld [vmem:[#allocation2 + $0xe0] sm:$0xff]  ;;  %v128_v33 = vld [vmem:[#allocation2 + $0xe8] sm:$0xff]  ;;  %250 = vmatpush.msra.mxu0 %v131_v28  ;;  %290 = vmatpush.msra.mxu2 %v132_v29  ;;  %v145_v15 = vld [vmem:[#allocation2 + $0x170] sm:$0xff] }
  0x20   :  { %v191_v34 = vld [vmem:[#allocation2 + $0x2e0] sm:$0xff]  ;;  %v192_v35 = vld [vmem:[#allocation2 + $0x2e8] sm:$0xff]  ;;  %270 = vmatpush.msra.mxu1 %v195_v30  ;;  %310 = vmatpush.msra.mxu3 %v196_v31  ;;  %v213_v16 = vld [vmem:[#allocation2 + $0x390] sm:$0xff] }
  0x21   :  { %v123_v36 = vld [vmem:[#allocation2 + $0xc0] sm:$0xff]  ;;  %v124_v37 = vld [vmem:[#allocation2 + $0xc8] sm:$0xff]  ;;  %251 = vmatpush.msra.mxu0 %v127_v32  ;;  %291 = vmatpush.msra.mxu2 %v128_v33  ;;  %v146_v17 = vld [vmem:[#allocation2 + $0x178] sm:$0xff] }
  0x22   :  { %v187_v38 = vld [vmem:[#allocation2 + $0x2c0] sm:$0xff]  ;;  %v188_v39 = vld [vmem:[#allocation2 + $0x2c8] sm:$0xff]  ;;  %271 = vmatpush.msra.mxu1 %v191_v34  ;;  %311 = vmatpush.msra.mxu3 %v192_v35  ;;  %v214_v18 = vld [vmem:[#allocation2 + $0x398] sm:$0xff] }
  0x23   :  { %v119_v40 = vld [vmem:[#allocation2 + $0xa0] sm:$0xff]  ;;  %v120_v41 = vld [vmem:[#allocation2 + $0xa8] sm:$0xff]  ;;  %252 = vmatpush.msra.mxu0 %v123_v36  ;;  %292 = vmatpush.msra.mxu2 %v124_v37  ;;  %v141_v19 = vld [vmem:[#allocation2 + $0x150] sm:$0xff] }
  0x24   :  { %v183_v42 = vld [vmem:[#allocation2 + $0x2a0] sm:$0xff]  ;;  %v184_v43 = vld [vmem:[#allocation2 + $0x2a8] sm:$0xff]  ;;  %272 = vmatpush.msra.mxu1 %v187_v38  ;;  %312 = vmatpush.msra.mxu3 %v188_v39  ;;  %v209_v20 = vld [vmem:[#allocation2 + $0x370] sm:$0xff] }
  0x25   :  { %v115_v44 = vld [vmem:[#allocation2 + $0x80] sm:$0xff]  ;;  %v116_v45 = vld [vmem:[#allocation2 + $0x88] sm:$0xff]  ;;  %253 = vmatpush.msra.mxu0 %v119_v40  ;;  %293 = vmatpush.msra.mxu2 %v120_v41  ;;  %v142_v21 = vld [vmem:[#allocation2 + $0x158] sm:$0xff] }
  0x26   :  { %v179_v46 = vld [vmem:[#allocation2 + $0x280] sm:$0xff]  ;;  %v180_v47 = vld [vmem:[#allocation2 + $0x288] sm:$0xff]  ;;  %273 = vmatpush.msra.mxu1 %v183_v42  ;;  %313 = vmatpush.msra.mxu3 %v184_v43  ;;  %v210_v22 = vld [vmem:[#allocation2 + $0x378] sm:$0xff] }
  0x27   :  { %v111_v48 = vld [vmem:[#allocation2 + $0x60] sm:$0xff]  ;;  %v112_v49 = vld [vmem:[#allocation2 + $0x68] sm:$0xff]  ;;  %254 = vmatpush.msra.mxu0 %v115_v44  ;;  %294 = vmatpush.msra.mxu2 %v116_v45  ;;  %v137_v23 = vld [vmem:[#allocation2 + $0x130] sm:$0xff] }
  0x28   :  { %v175_v50 = vld [vmem:[#allocation2 + $0x260] sm:$0xff]  ;;  %v176_v51 = vld [vmem:[#allocation2 + $0x268] sm:$0xff]  ;;  %274 = vmatpush.msra.mxu1 %v179_v46  ;;  %314 = vmatpush.msra.mxu3 %v180_v47  ;;  %v205_v24 = vld [vmem:[#allocation2 + $0x350] sm:$0xff] }
  0x29   :  { %v107_v52 = vld [vmem:[#allocation2 + $0x40] sm:$0xff]  ;;  %v108_v53 = vld [vmem:[#allocation2 + $0x48] sm:$0xff]  ;;  %255 = vmatpush.msra.mxu0 %v111_v48  ;;  %295 = vmatpush.msra.mxu2 %v112_v49  ;;  %v138_v25 = vld [vmem:[#allocation2 + $0x138] sm:$0xff] }
  0x2a   :  { %v171_v54 = vld [vmem:[#allocation2 + $0x240] sm:$0xff]  ;;  %v172_v55 = vld [vmem:[#allocation2 + $0x248] sm:$0xff]  ;;  %275 = vmatpush.msra.mxu1 %v175_v50  ;;  %315 = vmatpush.msra.mxu3 %v176_v51  ;;  %v206_v26 = vld [vmem:[#allocation2 + $0x358] sm:$0xff] }
  0x2b   :  { %v103_v56 = vld [vmem:[#allocation2 + $0x20] sm:$0xff]  ;;  %v104_v57 = vld [vmem:[#allocation2 + $0x28] sm:$0xff]  ;;  %256 = vmatpush.msra.mxu0 %v107_v52  ;;  %296 = vmatpush.msra.mxu2 %v108_v53  ;;  %v133_v27 = vld [vmem:[#allocation2 + $0x110] sm:$0xff] }
  0x2c   :  { %v167_v58 = vld [vmem:[#allocation2 + $0x220] sm:$0xff]  ;;  %v168_v59 = vld [vmem:[#allocation2 + $0x228] sm:$0xff]  ;;  %276 = vmatpush.msra.mxu1 %v171_v54  ;;  %316 = vmatpush.msra.mxu3 %v172_v55  ;;  %v201_v28 = vld [vmem:[#allocation2 + $0x330] sm:$0xff] }
  0x2d   :  { %v99_v60 = vld [vmem:[#allocation2] sm:$0xff]  ;;  %v100_v61 = vld [vmem:[#allocation2 + $0x8] sm:$0xff]  ;;  %257 = vmatpush.msra.mxu0 %v103_v56  ;;  %297 = vmatpush.msra.mxu2 %v104_v57  ;;  %v134_v29 = vld [vmem:[#allocation2 + $0x118] sm:$0xff] }
  0x2e   :  { %277 = vmatpush.msra.mxu1 %v167_v58  ;;  %317 = vmatpush.msra.mxu3 %v168_v59  ;;  %v163_v0 = vld [vmem:[#allocation2 + $0x200] sm:$0xff]  ;;  %v164_v1 = vld [vmem:[#allocation2 + $0x208] sm:$0xff]  ;;  %v202_v30 = vld [vmem:[#allocation2 + $0x338] sm:$0xff] }
  0x2f   :  { %258 = vmatpush.msra.mxu0 %v99_v60  ;;  %298 = vmatpush.msra.mxu2 %v100_v61  ;;  %v1129_v31 = vld.sshfl [vmem:[#allocation1] sm:$0xff pattern:$0x73625140]  ;;  %v129_v32 = vld [vmem:[#allocation2 + $0xf0] sm:$0xff] }
  0x30   :  { %278 = vmatpush.msra.mxu1 %v163_v0  ;;  %318 = vmatpush.msra.mxu3 %v164_v1  ;;  %v197_v33 = vld [vmem:[#allocation2 + $0x310] sm:$0xff]  ;;  %v130_v34 = vld [vmem:[#allocation2 + $0xf8] sm:$0xff]  ;;  %v1131_v36 = vld.sshfl [vmem:[#allocation1 + $0x8] sm:$0xff pattern:$0x73625140] }
  0x31   :  { %323 = vmatpush.msrb.mxu0 %v161_v62  ;;  %363 = vmatpush.msrb.mxu2 %v162_v63  ;;  %v198_v35 = vld [vmem:[#allocation2 + $0x318] sm:$0xff]  ;;  %v125_v37 = vld [vmem:[#allocation2 + $0xd0] sm:$0xff] }
  0x32   :  { %343 = vmatpush.msrb.mxu1 %v225_v3  ;;  %383 = vmatpush.msrb.mxu3 %v226_v6  ;;  %v193_v38 = vld [vmem:[#allocation2 + $0x2f0] sm:$0xff]  ;;  %v126_v39 = vld [vmem:[#allocation2 + $0xd8] sm:$0xff] }
  0x33   :  { %324 = vmatpush.msrb.mxu0 %v157_v2  ;;  %364 = vmatpush.msrb.mxu2 %v158_v5  ;;  %v194_v40 = vld [vmem:[#allocation2 + $0x2f8] sm:$0xff]  ;;  %v189_v41 = vld [vmem:[#allocation2 + $0x2d0] sm:$0xff] }
  0x34   :  { %344 = vmatpush.msrb.mxu1 %v221_v8  ;;  %384 = vmatpush.msrb.mxu3 %v222_v10  ;;  %v121_v42 = vld [vmem:[#allocation2 + $0xb0] sm:$0xff]  ;;  %v122_v43 = vld [vmem:[#allocation2 + $0xb8] sm:$0xff]  ;;  %v481_v8 = vld [vmem:[#allocation5 + $0x1e0] sm:$0xff] }
  0x35   :  { %325 = vmatpush.msrb.mxu0 %v153_v7  ;;  %365 = vmatpush.msrb.mxu2 %v154_v9  ;;  %v190_v44 = vld [vmem:[#allocation2 + $0x2d8] sm:$0xff]  ;;  %v117_v45 = vld [vmem:[#allocation2 + $0x90] sm:$0xff]  ;;  %v449_v7 = vld [vmem:[#allocation5 + $0xe0] sm:$0xff] }
  0x36   :  { %345 = vmatpush.msrb.mxu1 %v217_v12  ;;  %385 = vmatpush.msrb.mxu3 %v218_v14  ;;  %v185_v46 = vld [vmem:[#allocation2 + $0x2b0] sm:$0xff]  ;;  %v118_v47 = vld [vmem:[#allocation2 + $0x98] sm:$0xff]  ;;  %v513_v9 = vld [vmem:[#allocation5 + $0x2e0] sm:$0xff] }
  0x37   :  { %326 = vmatpush.msrb.mxu0 %v149_v11  ;;  %366 = vmatpush.msrb.mxu2 %v150_v13  ;;  %v186_v48 = vld [vmem:[#allocation2 + $0x2b8] sm:$0xff]  ;;  %v113_v49 = vld [vmem:[#allocation2 + $0x70] sm:$0xff]  ;;  %v545_v10 = vld [vmem:[#allocation5 + $0x3e0] sm:$0xff] }
  0x38   :  { %346 = vmatpush.msrb.mxu1 %v213_v16  ;;  %386 = vmatpush.msrb.mxu3 %v214_v18  ;;  %v181_v50 = vld [vmem:[#allocation2 + $0x290] sm:$0xff]  ;;  %v114_v51 = vld [vmem:[#allocation2 + $0x78] sm:$0xff]  ;;  %v477_v16 = vld [vmem:[#allocation5 + $0x1c0] sm:$0xff] }
  0x39   :  { %327 = vmatpush.msrb.mxu0 %v145_v15  ;;  %367 = vmatpush.msrb.mxu2 %v146_v17  ;;  %v182_v52 = vld [vmem:[#allocation2 + $0x298] sm:$0xff]  ;;  %v109_v53 = vld [vmem:[#allocation2 + $0x50] sm:$0xff]  ;;  %v445_v15 = vld [vmem:[#allocation5 + $0xc0] sm:$0xff] }
  0x3a   :  { %347 = vmatpush.msrb.mxu1 %v209_v20  ;;  %387 = vmatpush.msrb.mxu3 %v210_v22  ;;  %v177_v54 = vld [vmem:[#allocation2 + $0x270] sm:$0xff]  ;;  %v110_v55 = vld [vmem:[#allocation2 + $0x58] sm:$0xff]  ;;  %v509_v17 = vld [vmem:[#allocation5 + $0x2c0] sm:$0xff] }
  0x3b   :  { %328 = vmatpush.msrb.mxu0 %v141_v19  ;;  %368 = vmatpush.msrb.mxu2 %v142_v21  ;;  %v178_v56 = vld [vmem:[#allocation2 + $0x278] sm:$0xff]  ;;  %v105_v57 = vld [vmem:[#allocation2 + $0x30] sm:$0xff]  ;;  %v541_v18 = vld [vmem:[#allocation5 + $0x3c0] sm:$0xff] }
  0x3c   :  { %348 = vmatpush.msrb.mxu1 %v205_v24  ;;  %388 = vmatpush.msrb.mxu3 %v206_v26  ;;  %v173_v58 = vld [vmem:[#allocation2 + $0x250] sm:$0xff]  ;;  %v106_v59 = vld [vmem:[#allocation2 + $0x38] sm:$0xff]  ;;  %v473_v24 = vld [vmem:[#allocation5 + $0x1a0] sm:$0xff] }
  0x3d   :  { %329 = vmatpush.msrb.mxu0 %v137_v23  ;;  %369 = vmatpush.msrb.mxu2 %v138_v25  ;;  %v174_v60 = vld [vmem:[#allocation2 + $0x258] sm:$0xff]  ;;  %v101_v61 = vld [vmem:[#allocation2 + $0x10] sm:$0xff]  ;;  %v441_v23 = vld [vmem:[#allocation5 + $0xa0] sm:$0xff] }
  0x3e   :  { %349 = vmatpush.msrb.mxu1 %v201_v28  ;;  %389 = vmatpush.msrb.mxu3 %v202_v30  ;;  %v169_v62 = vld [vmem:[#allocation2 + $0x230] sm:$0xff]  ;;  %v102_v63 = vld [vmem:[#allocation2 + $0x18] sm:$0xff]  ;;  %v505_v25 = vld [vmem:[#allocation5 + $0x2a0] sm:$0xff] }
  0x3f   :  { %330 = vmatpush.msrb.mxu0 %v133_v27  ;;  %370 = vmatpush.msrb.mxu2 %v134_v29  ;;  %v170_v0 = vld [vmem:[#allocation2 + $0x238] sm:$0xff]  ;;  %v165_v1 = vld [vmem:[#allocation2 + $0x210] sm:$0xff]  ;;  %v537_v26 = vld [vmem:[#allocation5 + $0x3a0] sm:$0xff] }
  0x40   :  { %299 = vmatmul.f32.vlgmr.msra.gmra.mxu2 %v1129_v31  ;;  %350 = vmatpush.msrb.mxu1 %v197_v33  ;;  %v166_v2 = vld [vmem:[#allocation2 + $0x218] sm:$0xff]  ;;  %v451_v3 = vld [vmem:[#allocation5 + $0xf0] sm:$0xff]  ;;  %v501_v33 = vld [vmem:[#allocation5 + $0x280] sm:$0xff] }
  0x41   :  { %331 = vmatpush.msrb.mxu0 %v129_v32  ;;  %371 = vmatpush.msrb.mxu2 %v130_v34  ;;  %v483_v4 = vld [vmem:[#allocation5 + $0x1f0] sm:$0xff]  ;;  %v469_v32 = vld [vmem:[#allocation5 + $0x180] sm:$0xff] }
  0x42   :  { %390 = vmatpush.msrb.mxu3 %v198_v35  ;;  %351 = vmatpush.msrb.mxu1 %v193_v38  ;;  %v515_v5 = vld [vmem:[#allocation5 + $0x2f0] sm:$0xff]  ;;  %v533_v34 = vld [vmem:[#allocation5 + $0x380] sm:$0xff] }
  0x43   :  { %332 = vmatpush.msrb.mxu0 %v125_v37  ;;  %319 = vmatmul.f32.vlgmr.msra.gmra.mxu3 %v1131_v36  ;;  %v547_v6 = vld [vmem:[#allocation5 + $0x3f0] sm:$0xff] }
  0x44   :  { %372 = vmatpush.msrb.mxu2 %v126_v39  ;;  %391 = vmatpush.msrb.mxu3 %v194_v40  ;;  %v447_v11 = vld [vmem:[#allocation5 + $0xd0] sm:$0xff]  ;;  %v433_v39 = vld [vmem:[#allocation5 + $0x60] sm:$0xff] }
  0x45   :  { %259 = vmatmul.f32.vlgmr.msra.gmra.mxu0 %v1129_v31  ;;  %352 = vmatpush.msrb.mxu1 %v189_v41  ;;  %v479_v12 = vld [vmem:[#allocation5 + $0x1d0] sm:$0xff]  ;;  %v465_v40 = vld [vmem:[#allocation5 + $0x160] sm:$0xff] }
  0x46   :  { %333 = vmatpush.msrb.mxu0 %v121_v42  ;;  %373 = vmatpush.msrb.mxu2 %v122_v43  ;;  %v511_v13 = vld [vmem:[#allocation5 + $0x2d0] sm:$0xff]  ;;  %v497_v41 = vld [vmem:[#allocation5 + $0x260] sm:$0xff] }
  0x47   :  { %392 = vmatpush.msrb.mxu3 %v190_v44  ;;  %279 = vmatmul.f32.vlgmr.msra.gmra.mxu1 %v1131_v36  ;;  %v543_v14 = vld [vmem:[#allocation5 + $0x3d0] sm:$0xff]  ;;  %v529_v42 = vld [vmem:[#allocation5 + $0x360] sm:$0xff] }
  0x48   :  { %334 = vmatpush.msrb.mxu0 %v117_v45  ;;  %353 = vmatpush.msrb.mxu1 %v185_v46  ;;  %v443_v19 = vld [vmem:[#allocation5 + $0xb0] sm:$0xff] }
  0x49   :  { %374 = vmatpush.msrb.mxu2 %v118_v47  ;;  %393 = vmatpush.msrb.mxu3 %v186_v48  ;;  %v475_v20 = vld [vmem:[#allocation5 + $0x1b0] sm:$0xff]  ;;  %v429_v47 = vld [vmem:[#allocation5 + $0x40] sm:$0xff] }
  0x4a   :  { %335 = vmatpush.msrb.mxu0 %v113_v49  ;;  %354 = vmatpush.msrb.mxu1 %v181_v50  ;;  %v507_v21 = vld [vmem:[#allocation5 + $0x2b0] sm:$0xff]  ;;  %v461_v48 = vld [vmem:[#allocation5 + $0x140] sm:$0xff] }
  0x4b   :  { %375 = vmatpush.msrb.mxu2 %v114_v51  ;;  %394 = vmatpush.msrb.mxu3 %v182_v52  ;;  %v539_v22 = vld [vmem:[#allocation5 + $0x3b0] sm:$0xff]  ;;  %v493_v49 = vld [vmem:[#allocation5 + $0x240] sm:$0xff] }
  0x4c   :  { %336 = vmatpush.msrb.mxu0 %v109_v53  ;;  %355 = vmatpush.msrb.mxu1 %v177_v54  ;;  %v439_v27 = vld [vmem:[#allocation5 + $0x90] sm:$0xff]  ;;  %v525_v50 = vld [vmem:[#allocation5 + $0x340] sm:$0xff] }
  0x4d   :  { %376 = vmatpush.msrb.mxu2 %v110_v55  ;;  %395 = vmatpush.msrb.mxu3 %v178_v56  ;;  %v471_v28 = vld [vmem:[#allocation5 + $0x190] sm:$0xff]  ;;  %v425_v55 = vld [vmem:[#allocation5 + $0x20] sm:$0xff] }
  0x4e   :  { %337 = vmatpush.msrb.mxu0 %v105_v57  ;;  %356 = vmatpush.msrb.mxu1 %v173_v58  ;;  %v503_v29 = vld [vmem:[#allocation5 + $0x290] sm:$0xff]  ;;  %v457_v56 = vld [vmem:[#allocation5 + $0x120] sm:$0xff] }
  0x4f   :  { %377 = vmatpush.msrb.mxu2 %v106_v59  ;;  %396 = vmatpush.msrb.mxu3 %v174_v60  ;;  %v535_v30 = vld [vmem:[#allocation5 + $0x390] sm:$0xff]  ;;  %v489_v57 = vld [vmem:[#allocation5 + $0x220] sm:$0xff] }
  0x50   :  { %338 = vmatpush.msrb.mxu0 %v101_v61  ;;  %357 = vmatpush.msrb.mxu1 %v169_v62  ;;  %v435_v35 = vld [vmem:[#allocation5 + $0x70] sm:$0xff]  ;;  %v521_v58 = vld [vmem:[#allocation5 + $0x320] sm:$0xff] }
  0x51   :  { %378 = vmatpush.msrb.mxu2 %v102_v63  ;;  %397 = vmatpush.msrb.mxu3 %v170_v0  ;;  %v499_v37 = vld [vmem:[#allocation5 + $0x270] sm:$0xff]  ;;  %v421_v62 = vld [vmem:[#allocation5] sm:$0xff]  ;;  %v452_v0 = vld [vmem:[#allocation5 + $0xf8] sm:$0xff] }
  0x52   :  { %339 = vmatmul.f32.vlgmr.msrb.gmra.mxu0 %v1129_v31  ;;  %379 = vmatmul.f32.vlgmr.msrb.gmra.mxu2 %v1129_v31  ;;  %v437_v31 = vld [vmem:[#allocation5 + $0x80] sm:$0xff]  ;;  %v531_v38 = vld [vmem:[#allocation5 + $0x370] sm:$0xff] }
  0x53   :  { %358 = vmatpush.msrb.mxu1 %v165_v1  ;;  %398 = vmatpush.msrb.mxu3 %v166_v2  ;;  %v431_v43 = vld [vmem:[#allocation5 + $0x50] sm:$0xff]  ;;  %v453_v63 = vld [vmem:[#allocation5 + $0x100] sm:$0xff]  ;;  %v484_v1 = vld [vmem:[#allocation5 + $0x1f8] sm:$0xff] }
  0x54   :  { %359 = vmatmul.f32.vlgmr.msrb.gmra.mxu1 %v1131_v36  ;;  %399 = vmatmul.f32.vlgmr.msrb.gmra.mxu3 %v1131_v36  ;;  %v467_v36 = vld [vmem:[#allocation5 + $0x170] sm:$0xff]  ;;  %v485_v2 = vld [vmem:[#allocation5 + $0x200] sm:$0xff] }
  0x55   :  { %555 = vmatpush.msra.mxu0 %v451_v3  ;;  %575 = vmatpush.msra.mxu1 %v483_v4  ;;  %v463_v44 = vld [vmem:[#allocation5 + $0x150] sm:$0xff]  ;;  %v450_v3 = vld [vmem:[#allocation5 + $0xe8] sm:$0xff] }
  0x56   :  { %595 = vmatpush.msra.mxu2 %v515_v5  ;;  %615 = vmatpush.msra.mxu3 %v547_v6  ;;  %v495_v45 = vld [vmem:[#allocation5 + $0x250] sm:$0xff]  ;;  %v482_v4 = vld [vmem:[#allocation5 + $0x1e8] sm:$0xff]  ;;  %v516_v5 = vld [vmem:[#allocation5 + $0x2f8] sm:$0xff] }
  0x57   :  { %556 = vmatpush.msra.mxu0 %v449_v7  ;;  %576 = vmatpush.msra.mxu1 %v481_v8  ;;  %v527_v46 = vld [vmem:[#allocation5 + $0x350] sm:$0xff]  ;;  %v448_v6 = vld [vmem:[#allocation5 + $0xd8] sm:$0xff]  ;;  %v446_v8 = vld [vmem:[#allocation5 + $0xc8] sm:$0xff] }
  0x58   :  { %596 = vmatpush.msra.mxu2 %v513_v9  ;;  %616 = vmatpush.msra.mxu3 %v545_v10  ;;  %v427_v51 = vld [vmem:[#allocation5 + $0x30] sm:$0xff]  ;;  %v480_v7 = vld [vmem:[#allocation5 + $0x1d8] sm:$0xff]  ;;  %v478_v9 = vld [vmem:[#allocation5 + $0x1c8] sm:$0xff] }
  0x59   :  { %557 = vmatpush.msra.mxu0 %v447_v11  ;;  %577 = vmatpush.msra.mxu1 %v479_v12  ;;  %v459_v52 = vld [vmem:[#allocation5 + $0x130] sm:$0xff]  ;;  %v444_v10 = vld [vmem:[#allocation5 + $0xb8] sm:$0xff]  ;;  %v442_v12 = vld [vmem:[#allocation5 + $0xa8] sm:$0xff] }
  0x5a   :  { %597 = vmatpush.msra.mxu2 %v511_v13  ;;  %617 = vmatpush.msra.mxu3 %v543_v14  ;;  %v491_v53 = vld [vmem:[#allocation5 + $0x230] sm:$0xff]  ;;  %v476_v11 = vld [vmem:[#allocation5 + $0x1b8] sm:$0xff]  ;;  %v474_v13 = vld [vmem:[#allocation5 + $0x1a8] sm:$0xff] }
  0x5b   :  { %558 = vmatpush.msra.mxu0 %v445_v15  ;;  %578 = vmatpush.msra.mxu1 %v477_v16  ;;  %v523_v54 = vld [vmem:[#allocation5 + $0x330] sm:$0xff]  ;;  %v440_v14 = vld [vmem:[#allocation5 + $0x98] sm:$0xff]  ;;  %v438_v15 = vld [vmem:[#allocation5 + $0x88] sm:$0xff] }
  0x5c   :  { %598 = vmatpush.msra.mxu2 %v509_v17  ;;  %618 = vmatpush.msra.mxu3 %v541_v18  ;;  %v423_v59 = vld [vmem:[#allocation5 + $0x10] sm:$0xff]  ;;  %v472_v16 = vld [vmem:[#allocation5 + $0x198] sm:$0xff]  ;;  %v514_v17 = vld [vmem:[#allocation5 + $0x2e8] sm:$0xff] }
  0x5d   :  { %559 = vmatpush.msra.mxu0 %v443_v19  ;;  %579 = vmatpush.msra.mxu1 %v475_v20  ;;  %v455_v60 = vld [vmem:[#allocation5 + $0x110] sm:$0xff]  ;;  %v436_v19 = vld [vmem:[#allocation5 + $0x78] sm:$0xff]  ;;  %v470_v20 = vld [vmem:[#allocation5 + $0x188] sm:$0xff] }
  0x5e   :  { %599 = vmatpush.msra.mxu2 %v507_v21  ;;  %619 = vmatpush.msra.mxu3 %v539_v22  ;;  %v487_v61 = vld [vmem:[#allocation5 + $0x210] sm:$0xff]  ;;  %v512_v21 = vld [vmem:[#allocation5 + $0x2d8] sm:$0xff]  ;;  %v517_v22 = vld [vmem:[#allocation5 + $0x300] sm:$0xff] }
  0x5f   :  { %560 = vmatpush.msra.mxu0 %v441_v23  ;;  %580 = vmatpush.msra.mxu1 %v473_v24  ;;  %v519_v18 = vld [vmem:[#allocation5 + $0x310] sm:$0xff]  ;;  %v434_v23 = vld [vmem:[#allocation5 + $0x68] sm:$0xff]  ;;  %v468_v24 = vld [vmem:[#allocation5 + $0x178] sm:$0xff] }
  0x60   :  { %600 = vmatpush.msra.mxu2 %v505_v25  ;;  %620 = vmatpush.msra.mxu3 %v537_v26  ;;  %v510_v25 = vld [vmem:[#allocation5 + $0x2c8] sm:$0xff]  ;;  %v548_v26 = vld [vmem:[#allocation5 + $0x3f8] sm:$0xff] }
  0x61   :  { %561 = vmatpush.msra.mxu0 %v439_v27  ;;  %581 = vmatpush.msra.mxu1 %v471_v28  ;;  %v432_v27 = vld [vmem:[#allocation5 + $0x58] sm:$0xff]  ;;  %v466_v28 = vld [vmem:[#allocation5 + $0x168] sm:$0xff] }
  0x62   :  { %601 = vmatpush.msra.mxu2 %v503_v29  ;;  %621 = vmatpush.msra.mxu3 %v535_v30  ;;  %v508_v29 = vld [vmem:[#allocation5 + $0x2b8] sm:$0xff]  ;;  %v546_v30 = vld [vmem:[#allocation5 + $0x3e8] sm:$0xff] }
  0x63   :  { %562 = vmatpush.msra.mxu0 %v437_v31  ;;  %582 = vmatpush.msra.mxu1 %v469_v32  ;;  %v430_v31 = vld [vmem:[#allocation5 + $0x48] sm:$0xff]  ;;  %v464_v32 = vld [vmem:[#allocation5 + $0x158] sm:$0xff] }
  0x64   :  { %602 = vmatpush.msra.mxu2 %v501_v33  ;;  %622 = vmatpush.msra.mxu3 %v533_v34  ;;  %v506_v33 = vld [vmem:[#allocation5 + $0x2a8] sm:$0xff]  ;;  %v544_v34 = vld [vmem:[#allocation5 + $0x3d8] sm:$0xff] }
  0x65   :  { %563 = vmatpush.msra.mxu0 %v435_v35  ;;  %583 = vmatpush.msra.mxu1 %v467_v36  ;;  %v428_v35 = vld [vmem:[#allocation5 + $0x38] sm:$0xff]  ;;  %v462_v36 = vld [vmem:[#allocation5 + $0x148] sm:$0xff] }
  0x66   :  { %603 = vmatpush.msra.mxu2 %v499_v37  ;;  %623 = vmatpush.msra.mxu3 %v531_v38  ;;  %v504_v37 = vld [vmem:[#allocation5 + $0x298] sm:$0xff]  ;;  %v542_v38 = vld [vmem:[#allocation5 + $0x3c8] sm:$0xff] }
  0x67   :  { %564 = vmatpush.msra.mxu0 %v433_v39  ;;  %584 = vmatpush.msra.mxu1 %v465_v40  ;;  %v426_v39 = vld [vmem:[#allocation5 + $0x28] sm:$0xff]  ;;  %v460_v40 = vld [vmem:[#allocation5 + $0x138] sm:$0xff] }
  0x68   :  { %604 = vmatpush.msra.mxu2 %v497_v41  ;;  %624 = vmatpush.msra.mxu3 %v529_v42  ;;  %v502_v41 = vld [vmem:[#allocation5 + $0x288] sm:$0xff]  ;;  %v540_v42 = vld [vmem:[#allocation5 + $0x3b8] sm:$0xff] }
  0x69   :  { %565 = vmatpush.msra.mxu0 %v431_v43  ;;  %585 = vmatpush.msra.mxu1 %v463_v44  ;;  %v424_v43 = vld [vmem:[#allocation5 + $0x18] sm:$0xff]  ;;  %v458_v44 = vld [vmem:[#allocation5 + $0x128] sm:$0xff] }
  0x6a   :  { %605 = vmatpush.msra.mxu2 %v495_v45  ;;  %625 = vmatpush.msra.mxu3 %v527_v46  ;;  %v500_v45 = vld [vmem:[#allocation5 + $0x278] sm:$0xff]  ;;  %v538_v46 = vld [vmem:[#allocation5 + $0x3a8] sm:$0xff] }
  0x6b   :  { %566 = vmatpush.msra.mxu0 %v429_v47  ;;  %586 = vmatpush.msra.mxu1 %v461_v48  ;;  %v422_v47 = vld [vmem:[#allocation5 + $0x8] sm:$0xff]  ;;  %v456_v48 = vld [vmem:[#allocation5 + $0x118] sm:$0xff] }
  0x6c   :  { %606 = vmatpush.msra.mxu2 %v493_v49  ;;  %626 = vmatpush.msra.mxu3 %v525_v50  ;;  %v498_v49 = vld [vmem:[#allocation5 + $0x268] sm:$0xff]  ;;  %v536_v50 = vld [vmem:[#allocation5 + $0x398] sm:$0xff] }
  0x6d   :  { %567 = vmatpush.msra.mxu0 %v427_v51  ;;  %587 = vmatpush.msra.mxu1 %v459_v52  ;;  %v454_v51 = vld [vmem:[#allocation5 + $0x108] sm:$0xff]  ;;  %v496_v52 = vld [vmem:[#allocation5 + $0x258] sm:$0xff] }
  0x6e   :  { %607 = vmatpush.msra.mxu2 %v491_v53  ;;  %627 = vmatpush.msra.mxu3 %v523_v54  ;;  %v534_v53 = vld [vmem:[#allocation5 + $0x388] sm:$0xff] }
  0x6f   :  { %568 = vmatpush.msra.mxu0 %v425_v55  ;;  %588 = vmatpush.msra.mxu1 %v457_v56  ;;  %v494_v54 = vld [vmem:[#allocation5 + $0x248] sm:$0xff]  ;;  %v532_v55 = vld [vmem:[#allocation5 + $0x378] sm:$0xff] }
  0x70   :  { %608 = vmatpush.msra.mxu2 %v489_v57  ;;  %628 = vmatpush.msra.mxu3 %v521_v58  ;;  %v492_v56 = vld [vmem:[#allocation5 + $0x238] sm:$0xff]  ;;  %v530_v57 = vld [vmem:[#allocation5 + $0x368] sm:$0xff] }
  0x71   :  { %569 = vmatpush.msra.mxu0 %v423_v59  ;;  %589 = vmatpush.msra.mxu1 %v455_v60  ;;  %v490_v58 = vld [vmem:[#allocation5 + $0x228] sm:$0xff]  ;;  %v528_v59 = vld [vmem:[#allocation5 + $0x358] sm:$0xff] }
  0x72   :  { %609 = vmatpush.msra.mxu2 %v487_v61  ;;  %629 = vmatpush.msra.mxu3 %v519_v18  ;;  %v227_v60 = vld [vmem:[%s1245_s2] sm:$0xf] }
  0x73   :  { %570 = vmatpush.msra.mxu0 %v421_v62  ;;  %590 = vmatpush.msra.mxu1 %v453_v63  ;;  %v488_v61 = vld [vmem:[#allocation5 + $0x218] sm:$0xff]  ;;  %v526_v62 = vld [vmem:[#allocation5 + $0x348] sm:$0xff] }
  0x74   :  { %610 = vmatpush.msra.mxu2 %v485_v2  ;;  %630 = vmatpush.msra.mxu3 %v517_v22  ;;  %v486_v63 = vld [vmem:[#allocation5 + $0x208] sm:$0xff]  ;;  %v230_v2 = vperm.slane %v227_v60, 1 }
  0x75   :  { %635 = vmatpush.msrb.mxu0 %v452_v0  ;;  %655 = vmatpush.msrb.mxu1 %v484_v1  ;;  %v524_v0 = vld [vmem:[#allocation5 + $0x338] sm:$0xff]  ;;  %v229_v1 = vperm.slane %v227_v60, 0 }
  0x76   :  { %675 = vmatpush.msrb.mxu2 %v516_v5  ;;  %695 = vmatpush.msrb.mxu3 %v548_v26 }
  0x77   :  { %636 = vmatpush.msrb.mxu0 %v450_v3  ;;  %656 = vmatpush.msrb.mxu1 %v482_v4  ;;  %v522_v3 = vld [vmem:[#allocation5 + $0x328] sm:$0xff]  ;;  %v520_v4 = vld [vmem:[#allocation5 + $0x318] sm:$0xff] }
  0x78   :  { %676 = vmatpush.msrb.mxu2 %v514_v17  ;;  %696 = vmatpush.msrb.mxu3 %v546_v30 }
  0x79   :  { %637 = vmatpush.msrb.mxu0 %v448_v6  ;;  %657 = vmatpush.msrb.mxu1 %v480_v7  ;;  %v407_v6 = vld [vmem:[%s1246_s3] sm:$0xf] }
  0x7a   :  { %677 = vmatpush.msrb.mxu2 %v512_v21  ;;  %697 = vmatpush.msrb.mxu3 %v544_v34  ;;  %v410_v17 = vperm.slane %v407_v6, 1  ;;  %v231_v21 = vperm.slane %v227_v60, 2  ;;  %v411_v26 = vperm.slane %v407_v6, 2  ;;  %v412_v34 = vperm.slane %v407_v6, 3 }
  0x7b   :  { %638 = vmatpush.msrb.mxu0 %v446_v8  ;;  %658 = vmatpush.msrb.mxu1 %v478_v9  ;;  %v518_v9 = vld [vmem:[#allocation5 + $0x308] sm:$0xff] }
  0x7c   :  { %678 = vmatpush.msrb.mxu2 %v510_v25  ;;  %698 = vmatpush.msrb.mxu3 %v542_v38  ;;  %v739_v38 = vld [vmem:[#allocation7 + $0x70] sm:$0xff] }
  0x7d   :  { %639 = vmatpush.msrb.mxu0 %v444_v10  ;;  %659 = vmatpush.msrb.mxu1 %v476_v11 }
  0x7e   :  { %679 = vmatpush.msrb.mxu2 %v508_v29  ;;  %699 = vmatpush.msrb.mxu3 %v540_v42  ;;  %v756_v42 = vld [vmem:[#allocation7 + $0xf8] sm:$0xff] }
  0x7f   :  { %640 = vmatpush.msrb.mxu0 %v442_v12  ;;  %660 = vmatpush.msrb.mxu1 %v474_v13  ;;  %v409_v13 = vperm.slane %v407_v6, 0  ;;  %v821_v6 = vld [vmem:[%s1253_s10 + $0x70] sm:$0xff] }
  0x80   :  { %680 = vmatpush.msrb.mxu2 %v506_v33  ;;  %700 = vmatpush.msrb.mxu3 %v538_v46  ;;  %v754_v46 = vld [vmem:[#allocation7 + $0xe8] sm:$0xff] }
  0x81   :  { %641 = vmatpush.msrb.mxu0 %v440_v14  ;;  %661 = vmatpush.msrb.mxu1 %v472_v16 }
  0x82   :  { %681 = vmatpush.msrb.mxu2 %v504_v37  ;;  %701 = vmatpush.msrb.mxu3 %v536_v50  ;;  %v740_v37 = vld [vmem:[#allocation7 + $0x78] sm:$0xff] }
  0x83   :  { %642 = vmatpush.msrb.mxu0 %v438_v15  ;;  %662 = vmatpush.msrb.mxu1 %v470_v20  ;;  %v752_v50 = vld [vmem:[#allocation7 + $0xd8] sm:$0xff] }
  0x84   :  { %682 = vmatpush.msrb.mxu2 %v502_v41  ;;  %702 = vmatpush.msrb.mxu3 %v534_v53  ;;  %v736_v41 = vld [vmem:[#allocation7 + $0x58] sm:$0xff]  ;;  %v730_v53 = vld [vmem:[#allocation7 + $0x28] sm:$0xff] }
  0x85   :  { %643 = vmatpush.msrb.mxu0 %v436_v19  ;;  %663 = vmatpush.msrb.mxu1 %v468_v24 }
  0x86   :  { %683 = vmatpush.msrb.mxu2 %v500_v45  ;;  %703 = vmatpush.msrb.mxu3 %v532_v55  ;;  %v734_v45 = vld [vmem:[#allocation7 + $0x48] sm:$0xff]  ;;  %v729_v55 = vld [vmem:[#allocation7 + $0x20] sm:$0xff] }
  0x87   :  { %644 = vmatpush.msrb.mxu0 %v434_v23  ;;  %664 = vmatpush.msrb.mxu1 %v466_v28 }
  0x88   :  { %684 = vmatpush.msrb.mxu2 %v498_v49  ;;  %704 = vmatpush.msrb.mxu3 %v530_v57  ;;  %v732_v49 = vld [vmem:[#allocation7 + $0x38] sm:$0xff] }
  0x89   :  { %645 = vmatpush.msrb.mxu0 %v432_v27  ;;  %665 = vmatpush.msrb.mxu1 %v464_v32  ;;  %v232_v27 = vperm.slane %v227_v60, 3  ;;  %v728_v57 = vld [vmem:[#allocation7 + $0x18] sm:$0xff]  ;;  %v747_v60 = vld [vmem:[#allocation7 + $0xb0] sm:$0xff] }
  0x8a   :  { %685 = vmatpush.msrb.mxu2 %v496_v52  ;;  %705 = vmatpush.msrb.mxu3 %v528_v59  ;;  %v751_v52 = vld [vmem:[#allocation7 + $0xd0] sm:$0xff] }
  0x8b   :  { %646 = vmatpush.msrb.mxu0 %v430_v31  ;;  %666 = vmatpush.msrb.mxu1 %v462_v36  ;;  %v727_v59 = vld [vmem:[#allocation7 + $0x10] sm:$0xff] }
  0x8c   :  { %686 = vmatpush.msrb.mxu2 %v494_v54  ;;  %706 = vmatpush.msrb.mxu3 %v526_v62  ;;  %v750_v54 = vld [vmem:[#allocation7 + $0xc8] sm:$0xff] }
  0x8d   :  { %647 = vmatpush.msrb.mxu0 %v428_v35  ;;  %667 = vmatpush.msrb.mxu1 %v460_v40  ;;  %v737_v40 = vld [vmem:[#allocation7 + $0x60] sm:$0xff]  ;;  %v746_v62 = vld [vmem:[#allocation7 + $0xa8] sm:$0xff] }
  0x8e   :  { %687 = vmatpush.msrb.mxu2 %v492_v56  ;;  %707 = vmatpush.msrb.mxu3 %v524_v0  ;;  %v749_v56 = vld [vmem:[#allocation7 + $0xc0] sm:$0xff] }
  0x8f   :  { %648 = vmatpush.msrb.mxu0 %v426_v39  ;;  %668 = vmatpush.msrb.mxu1 %v458_v44  ;;  %v738_v39 = vld [vmem:[#allocation7 + $0x68] sm:$0xff]  ;;  %v755_v44 = vld [vmem:[#allocation7 + $0xf0] sm:$0xff]  ;;  %v745_v0 = vld [vmem:[#allocation7 + $0xa0] sm:$0xff] }
  0x90   :  { %688 = vmatpush.msrb.mxu2 %v490_v58  ;;  %708 = vmatpush.msrb.mxu3 %v522_v3  ;;  %v748_v58 = vld [vmem:[#allocation7 + $0xb8] sm:$0xff]  ;;  %v742_v3 = vld [vmem:[#allocation7 + $0x88] sm:$0xff] }
  0x91   :  { %649 = vmatpush.msrb.mxu0 %v424_v43  ;;  %669 = vmatpush.msrb.mxu1 %v456_v48  ;;  %v735_v43 = vld [vmem:[#allocation7 + $0x50] sm:$0xff]  ;;  %v753_v48 = vld [vmem:[#allocation7 + $0xe0] sm:$0xff] }
  0x92   :  { %689 = vmatpush.msrb.mxu2 %v488_v61  ;;  %709 = vmatpush.msrb.mxu3 %v520_v4  ;;  %v726_v61 = vld [vmem:[#allocation7 + $0x8] sm:$0xff]  ;;  %v741_v4 = vld [vmem:[#allocation7 + $0x80] sm:$0xff] }
  0x93   :  { %650 = vmatpush.msrb.mxu0 %v422_v47  ;;  %670 = vmatpush.msrb.mxu1 %v454_v51  ;;  %v733_v47 = vld [vmem:[#allocation7 + $0x40] sm:$0xff]  ;;  %v731_v51 = vld [vmem:[#allocation7 + $0x30] sm:$0xff] }
  0x94   :  { %690 = vmatpush.msrb.mxu2 %v486_v63  ;;  %710 = vmatpush.msrb.mxu3 %v518_v9  ;;  %v725_v63 = vld [vmem:[#allocation7] sm:$0xff]  ;;  %v819_v9 = vld [vmem:[%s1253_s10 + $0x60] sm:$0xff] }
  0xc2   :  { %v260_v5 = vpop.f32.mrf.mxu0 }
  0xc3   :  { %v261_v7 = vadd.f32 %v260_v5, %v229_v1  ;;  %v300_v8 = vpop.f32.mrf.mxu2  ;;  %v744_v1 = vld [vmem:[#allocation7 + $0x98] sm:$0xff]  ;;  %v822_v5 = vld [vmem:[%s1253_s10 + $0x78] sm:$0xff] }
  0xc4   :  { %v280_v10 = vpop.f32.mrf.mxu1  ;;  %v301_v11 = vadd.f32 %v300_v8, %v230_v2  ;;  %v743_v2 = vld [vmem:[#allocation7 + $0x90] sm:$0xff]  ;;  %v549_v8 = vld [vmem:[%s1248_s5] sm:$0x3] }
  0xc5   :  { %v281_v12 = vadd.f32 %v280_v10, %v261_v7  ;;  %v820_v7 = vld [vmem:[%s1253_s10 + $0x68] sm:$0xff] }
  0xc6   :  { %v320_v14 = vpop.f32.mrf.mxu3 }
  0xc7   :  { %v403_v15 = vmax.f32 %v281_v12, 0.0  ;;  %v321_v16 = vadd.f32 %v320_v14, %v301_v11  ;;  %v551_v11 = vperm.slane %v549_v8, 0  ;;  %v818_v12 = vld [vmem:[%s1253_s10 + $0x58] sm:$0xff] }
  0xc9   :  { %v417_v18 = vadd.f32 %v409_v13, %v403_v15  ;;  %v404_v19 = vmax.f32 %v321_v16, 0.0  ;;  %v817_v13 = vld [vmem:[%s1253_s10 + $0x50] sm:$0xff]  ;;  %v816_v16 = vld [vmem:[%s1253_s10 + $0x48] sm:$0xff] }
  0xcb   :  { %v418_v20 = vadd.f32 %v410_v17, %v404_v19  ;;  %571 = vmatmul.f32.vlgmr.msra.gmra.mxu0 %v417_v18 }
  0xcc   :  { %761 = vmatpush.msra.mxu0 %v740_v37 }
  0xcd   :  { %591 = vmatmul.f32.vlgmr.msra.gmra.mxu1 %v418_v20 }
  0xce   :  { %762 = vmatpush.msra.mxu0 %v739_v38  ;;  %781 = vmatpush.msra.mxu1 %v756_v42  ;;  %v811_v42 = vld [vmem:[%s1253_s10 + $0x20] sm:$0xff] }
  0xcf   :  { %v340_v22 = vpop.f32.mrf.mxu0 }
  0xd0   :  { %v341_v23 = vadd.f32 %v340_v22, %v231_v21  ;;  %763 = vmatpush.msra.mxu0 %v738_v39  ;;  %782 = vmatpush.msra.mxu1 %v755_v44  ;;  %v717_v22 = vld [vmem:[%s1249_s6] sm:$0x3]  ;;  %v814_v39 = vld [vmem:[%s1253_s10 + $0x38] sm:$0xff]  ;;  %v809_v44 = vld [vmem:[%s1253_s10 + $0x10] sm:$0xff] }
  0xd1   :  { %v360_v24 = vpop.f32.mrf.mxu1 }
  0xd2   :  { %v361_v25 = vadd.f32 %v360_v24, %v341_v23  ;;  %764 = vmatpush.msra.mxu0 %v737_v40  ;;  %783 = vmatpush.msra.mxu1 %v754_v46  ;;  %v813_v40 = vld [vmem:[%s1253_s10 + $0x30] sm:$0xff]  ;;  %v807_v46 = vld [vmem:[%s1253_s10] sm:$0xff] }
  0xd3   :  { %651 = vmatmul.f32.vlgmr.msrb.gmra.mxu0 %v417_v18  ;;  %v815_v18 = vld [vmem:[%s1253_s10 + $0x40] sm:$0xff] }
  0xd4   :  { %v405_v28 = vmax.f32 %v361_v25, 0.0  ;;  %765 = vmatpush.msra.mxu0 %v736_v41  ;;  %784 = vmatpush.msra.mxu1 %v753_v48  ;;  %v812_v41 = vld [vmem:[%s1253_s10 + $0x28] sm:$0xff]  ;;  %v859_v48 = vld [vmem:[%s1256_s13 + $0x30] sm:$0xff] }
  0xd5   :  { %v380_v29 = vpop.f32.mrf.mxu2  ;;  %671 = vmatmul.f32.vlgmr.msrb.gmra.mxu1 %v418_v20  ;;  %v552_v20 = vperm.slane %v549_v8, 1 }
  0xd6   :  { %v419_v30 = vadd.f32 %v411_v26, %v405_v28  ;;  %v381_v31 = vadd.f32 %v380_v29, %v232_v27  ;;  %766 = vmatpush.msra.mxu0 %v735_v43  ;;  %785 = vmatpush.msra.mxu1 %v752_v50  ;;  %v719_v27 = vperm.slane %v717_v22, 0  ;;  %v810_v43 = vld [vmem:[%s1253_s10 + $0x18] sm:$0xff]  ;;  %v857_v50 = vld [vmem:[%s1256_s13 + $0x20] sm:$0xff] }
  0xd7   :  { %v400_v32 = vpop.f32.mrf.mxu3 }
  0xd8   :  { %v401_v33 = vadd.f32 %v400_v32, %v381_v31  ;;  %611 = vmatmul.f32.vlgmr.msra.gmra.mxu2 %v419_v30  ;;  %767 = vmatpush.msra.mxu0 %v734_v45  ;;  %v808_v45 = vld [vmem:[%s1253_s10 + $0x8] sm:$0xff] }
  0xd9   :  { %786 = vmatpush.msra.mxu1 %v751_v52  ;;  %827 = vmatpush.msra.mxu2 %v822_v5  ;;  %v924_v5 = vld [vmem:[%s1257_s14] ss:$0 sm:$0xff] }
  0xda   :  { %v406_v35 = vmax.f32 %v401_v33, 0.0  ;;  %768 = vmatpush.msra.mxu0 %v733_v47  ;;  %v860_v47 = vld [vmem:[%s1256_s13 + $0x38] sm:$0xff] }
  0xdb   :  { %787 = vmatpush.msra.mxu1 %v750_v54  ;;  %828 = vmatpush.msra.mxu2 %v821_v6 }
  0xdc   :  { %v420_v36 = vadd.f32 %v412_v34, %v406_v35  ;;  %769 = vmatpush.msra.mxu0 %v732_v49  ;;  %v858_v49 = vld [vmem:[%s1256_s13 + $0x28] sm:$0xff] }
  0xdd   :  { %788 = vmatpush.msra.mxu1 %v749_v56  ;;  %829 = vmatpush.msra.mxu2 %v820_v7  ;;  %v921_v56 = vld [vmem:[%s1252_s9] ss:$0 sm:$0xff] }
  0xde   :  { %631 = vmatmul.f32.vlgmr.msra.gmra.mxu3 %v420_v36  ;;  %770 = vmatpush.msra.mxu0 %v731_v51  ;;  %v920_v51 = vld [vmem:[%s1251_s8] ss:$0 sm:$0xff] }
  0xdf   :  { %789 = vmatpush.msra.mxu1 %v748_v58  ;;  %830 = vmatpush.msra.mxu2 %v819_v9 }
  0xe0   :  { %691 = vmatmul.f32.vlgmr.msrb.gmra.mxu2 %v419_v30  ;;  %771 = vmatpush.msra.mxu0 %v730_v53 }
  0xe1   :  { %790 = vmatpush.msra.mxu1 %v747_v60  ;;  %831 = vmatpush.msra.mxu2 %v818_v12  ;;  %v855_v60 = vld [vmem:[%s1256_s13 + $0x10] sm:$0xff] }
  0xe2   :  { %772 = vmatpush.msra.mxu0 %v729_v55  ;;  %877 = vmatpush.msra.mxu3 %v860_v47 }
  0xe3   :  { %791 = vmatpush.msra.mxu1 %v746_v62  ;;  %832 = vmatpush.msra.mxu2 %v817_v13  ;;  %v853_v62 = vld [vmem:[%s1256_s13] sm:$0xff] }
  0xe4   :  { %773 = vmatpush.msra.mxu0 %v728_v57  ;;  %878 = vmatpush.msra.mxu3 %v859_v48 }
  0xe5   :  { %792 = vmatpush.msra.mxu1 %v745_v0  ;;  %833 = vmatpush.msra.mxu2 %v816_v16 }
  0xe6   :  { %711 = vmatmul.f32.vlgmr.msrb.gmra.mxu3 %v420_v36  ;;  %774 = vmatpush.msra.mxu0 %v727_v59  ;;  %v720_v36 = vperm.slane %v717_v22, 1  ;;  %v856_v59 = vld [vmem:[%s1256_s13 + $0x18] sm:$0xff] }
  0xe7   :  { %793 = vmatpush.msra.mxu1 %v744_v1  ;;  %834 = vmatpush.msra.mxu2 %v815_v18 }
  0xe8   :  { %775 = vmatpush.msra.mxu0 %v726_v61  ;;  %879 = vmatpush.msra.mxu3 %v858_v49  ;;  %v854_v61 = vld [vmem:[%s1256_s13 + $0x8] sm:$0xff]  ;;  %s1036_s13 = smov [#allocation8]  }
  0xe9   :  { %794 = vmatpush.msra.mxu1 %v743_v2  ;;  %835 = vmatpush.msra.mxu2 %v814_v39  ;;  %v923_v2 = vld [vmem:[%s1255_s12] ss:$0 sm:$0xff]  ;;  %s896_s23 = sshll.u32 %s1036_s13, 4  ;;  %s897_s23 = int_to_ptr.vmem [resolvable:$true] %s896_s23 }
  0xea   :  { %776 = vmatpush.msra.mxu0 %v725_v63  ;;  %880 = vmatpush.msra.mxu3 %v857_v50  ;;  %v922_v63 = vld [vmem:[%s1254_s11] ss:$0 sm:$0xff]  ;;  %s898_s11 = sshll.u32 %s1258_s15, 4  ;;  %s899_s11 = int_to_ptr.hbm [resolvable:$true] %s898_s11 }
  0xeb   :  { %795 = vmatpush.msra.mxu1 %v742_v3  ;;  %836 = vmatpush.msra.mxu2 %v813_v40 }
  0xec   :  { %881 = vmatpush.msra.mxu3 %v856_v59 }
  0xed   :  { %796 = vmatpush.msra.mxu1 %v741_v4  ;;  %837 = vmatpush.msra.mxu2 %v812_v41 }
  0xee   :  { %882 = vmatpush.msra.mxu3 %v855_v60 }
  0xef   :  { %838 = vmatpush.msra.mxu2 %v811_v42 }
  0xf0   :  { %883 = vmatpush.msra.mxu3 %v854_v61 }
  0xf1   :  { %839 = vmatpush.msra.mxu2 %v810_v43 }
  0xf2   :  { %884 = vmatpush.msra.mxu3 %v853_v62 }
  0xf3   :  { %840 = vmatpush.msra.mxu2 %v809_v44 }
  0xf5   :  { %841 = vmatpush.msra.mxu2 %v808_v45 }
  0xf7   :  { %842 = vmatpush.msra.mxu2 %v807_v46 }
 0x148   :  { %v572_v10 = vpop.f32.mrf.mxu0 }
 0x149   :  { %v573_v15 = vadd.f32 %v572_v10, %v551_v11 }
 0x14a   :  { %v592_v14 = vpop.f32.mrf.mxu1 }
 0x14b   :  { %v593_v19 = vadd.f32 %v592_v14, %v573_v15 }
 0x150   :  { %v652_v21 = vpop.f32.mrf.mxu0 }
 0x151   :  { %v653_v25 = vadd.f32 %v652_v21, %v552_v20 }
 0x152   :  { %v672_v28 = vpop.f32.mrf.mxu1 }
 0x153   :  { %v673_v31 = vadd.f32 %v672_v28, %v653_v25 }
 0x15b   :  { %v612_v17 = vpop.f32.mrf.mxu2 }
 0x15c   :  { %v613_v23 = vadd.f32 %v612_v17, %v593_v19 }
 0x161   :  { %v632_v24 = vpop.f32.mrf.mxu3 }
 0x162   :  { %v633_v26 = vadd.f32 %v632_v24, %v613_v23 }
 0x163   :  { %v692_v30 = vpop.f32.mrf.mxu2 }
 0x164   :  { %v715_v29 = vmax.f32 %v633_v26, 0.0  ;;  %v693_v33 = vadd.f32 %v692_v30, %v673_v31 }
 0x166   :  { %v723_v32 = vadd.f32 %v719_v27, %v715_v29 }
 0x168   :  { %777 = vmatmul.f32.vlgmr.msra.gmra.mxu0 %v723_v32 }
 0x169   :  { %v712_v34 = vpop.f32.mrf.mxu3 }
 0x16a   :  { %v713_v35 = vadd.f32 %v712_v34, %v693_v33 }
 0x16c   :  { %v716_v37 = vmax.f32 %v713_v35, 0.0 }
 0x16e   :  { %v724_v38 = vadd.f32 %v720_v36, %v716_v37 }
 0x170   :  { %797 = vmatmul.f32.vlgmr.msra.gmra.mxu1 %v724_v38 }
 0x1e5   :  { %v778_v52 = vpop.f32.mrf.mxu0 }
 0x1e6   :  { %v779_v53 = vadd.f32 %v920_v51, %v778_v52 }
 0x1ed   :  { %v798_v54 = vpop.f32.mrf.mxu1 }
 0x1ee   :  { %v799_v55 = vadd.f32 %v798_v54, %v779_v53 }
 0x1f0   :  { %v801_v57 = vmax.f32 %v799_v55, 0.0 }
 0x1f2   :  { %v806_v58 = vadd.f32 %v921_v56, %v801_v57 }
 0x1f4   :  { %843 = vmatmul.f32.vlgmr.msra.gmra.mxu2 %v806_v58 }
 0x277   :  { %v844_v0 = vpop.f32.mrf.mxu2 }
 0x278   :  { %v845_v1 = vadd.f32 %v922_v63, %v844_v0 }
 0x27a   :  { %v847_v3 = vmax.f32 %v845_v1, 0.0 }
 0x27c   :  { %v852_v4 = vadd.f32 %v923_v2, %v847_v3 }
 0x27e   :  { %909 = vmatmul.msk.f32.vlgmr.msra.gmra.mxu3 %vm865_vm0, %v852_v4 }
 0x301   :  { %v886_v6 = vpop.f32.mrf.mxu3 }
 0x302   :  { %v887_v7 = vadd.f32 %v924_v5, %v886_v6 }
 0x304   :  { %890 = vst.msk [vmem:[#allocation8] sm:$0x3] %vm889_vm1, %v887_v7 }
 0x305   :  { %901 = dma.vmem_to_hbm [thread:$0]  %s897_s23, 32, %s899_s11, [#allocation4]  }
 0x306   :  { %1025 = dma.done.wait [#allocation4], 32  }
 0x307   :  { %1026 = vsyncadd [#allocation4], 4294967264 }
 0x308   :  { %906 = vsyncpa [#allocation3], 1 }
 0x309   :  { %907 = vsyncpa [#allocation6], 1 }
 0x30a   :  { %908 = vsyncpa [#allocation4], 1 }

</bundles_post_ra>
